<compile_context>
chip_gen: v7x
topology: tpu7x:2x2x1
jax: 0.10.0
libtpu: 0.0.40
codegen_flags: <defaults>
</compile_context>

<pallas_src>
from functools import partial

import jax
import jax.numpy as jnp
from jax.experimental import pallas as pl
from jax.experimental.pallas import tpu as pltpu


def _round_up(x, m):
    return (x + m - 1) // m * m


def _oib_kernel(h_ref, c_ref, orig_ref,
                wout_ref, bout_ref,
                wcov_ref, bcov_ref,
                w1h_ref, w1c_ref, b1_ref,
                w2_ref, b2_ref,
                out_ref):
    cdt = wout_ref.dtype  # compute dtype (weights were pre-cast once)

    # Input projections + ReLU (f32 accumulation).
    h = jnp.dot(h_ref[...].astype(cdt), wout_ref[...], preferred_element_type=jnp.float32)
    h = jnp.maximum(h + bout_ref[...], 0.0)
    c = jnp.dot(c_ref[...].astype(cdt), wcov_ref[...], preferred_element_type=jnp.float32)
    c = jnp.maximum(c + bcov_ref[...], 0.0)

    # FFN layer 1 as split-K: == concat([relu_h, relu_c]) @ W1 + b1.
    z = jnp.dot(h.astype(cdt), w1h_ref[...], preferred_element_type=jnp.float32)
    z = z + jnp.dot(c.astype(cdt), w1c_ref[...], preferred_element_type=jnp.float32)
    z = jnp.maximum(z + b1_ref[...], 0.0)

    # FFN layer 2 + residual (residual kept in output dtype path, add in f32).
    adj = jnp.dot(z.astype(cdt), w2_ref[...], preferred_element_type=jnp.float32)
    adj = adj + b2_ref[...]
    out_ref[...] = (orig_ref[...].astype(jnp.float32) + adj).astype(out_ref.dtype)


def prepare_params(params, compute_dtype=jnp.bfloat16):
    """One-time weight preprocessing (do NOT call per forward step)."""
    hid = params["W_out"].shape[1]
    f32 = jnp.float32
    return {
        "W_out": params["W_out"].astype(compute_dtype),
        "b_out": params["b_out"].reshape(1, -1).astype(f32),
        "W_cov": params["W_cov"].astype(compute_dtype),
        "b_cov": params["b_cov"].reshape(1, -1).astype(f32),
        "W1h":   params["W1"][:hid, :].astype(compute_dtype),
        "W1c":   params["W1"][hid:, :].astype(compute_dtype),
        "b1":    params["b1"].reshape(1, -1).astype(f32),
        "W2":    params["W2"].astype(compute_dtype),
        "b2":    params["b2"].reshape(1, -1).astype(f32),
    }


@partial(jax.jit, static_argnames=("block_rows",))
def _oib_forward(hidden_states, future_covariates, original_outputs, prep, block_rows=1024):
    B, S, d_model = hidden_states.shape
    cov_dim = future_covariates.shape[-1]
    out_dim = original_outputs.shape[-1]
    hid = prep["W_out"].shape[1]
    ffn_hid = prep["W1h"].shape[1]
    out_dtype = original_outputs.dtype

    M = B * S
    # Balanced row tiles: TM multiple of 8, grid divides M_pad tightly.
    n_tiles = max(1, -(-M // block_rows))        # cdiv(M, block_rows)
    TM = _round_up(-(-M // n_tiles), 8)          # round_up(cdiv(M, n_tiles), 8)
    M_pad = TM * n_tiles

    h = hidden_states.reshape(M, d_model)        # free row-major reshapes
    c = future_covariates.reshape(M, cov_dim)
    o = original_outputs.reshape(M, out_dim)
    if M_pad != M:                               # only pad when strictly needed
        pad = ((0, M_pad - M), (0, 0))
        h = jnp.pad(h, pad)
        c = jnp.pad(c, pad)
        o = jnp.pad(o, pad)

    row_spec = lambda cols: pl.BlockSpec((TM, cols), lambda i: (i, 0))   # row-tiled
    resident = lambda shape: pl.BlockSpec(shape, lambda i: (0, 0))       # VMEM-resident

    out = pl.pallas_call(
        _oib_kernel,
        out_shape=jax.ShapeDtypeStruct((M_pad, out_dim), out_dtype),
        grid=(n_tiles,),
        in_specs=[
            row_spec(d_model),                 # hidden_states rows
            row_spec(cov_dim),                 # future_covariates rows
            row_spec(out_dim),                 # original_outputs rows (true width)
            resident((d_model, hid)),          # W_out
            resident((1, hid)),                # b_out
            resident((cov_dim, hid)),          # W_cov
            resident((1, hid)),                # b_cov
            resident((hid, ffn_hid)),          # W1 (hidden half)
            resident((hid, ffn_hid)),          # W1 (covariate half)
            resident((1, ffn_hid)),            # b1
            resident((ffn_hid, out_dim)),      # W2 (true width)
            resident((1, out_dim)),            # b2
        ],
        out_specs=row_spec(out_dim),
        compiler_params=pltpu.CompilerParams(dimension_semantics=("parallel",)),
    )(h, c, o,
      prep["W_out"], prep["b_out"], prep["W_cov"], prep["b_cov"],
      prep["W1h"], prep["W1c"], prep["b1"], prep["W2"], prep["b2"])

    return out[:M, :].reshape(B, S, out_dim)


def output_injection_block(hidden_states, future_covariates, original_outputs, prep,
                           block_rows=1024):
    """Pallas implementation of OutputInjectionBlock.forward (matched-shape path)."""
    if future_covariates is None:
        return original_outputs
    # TODO(synk): mismatched sequence-length branch (hidden_states[:, -1:] slice and
    # covariate averaging) is not implemented; shapes must match as in the main path.
    return _oib_forward(hidden_states, future_covariates, original_outputs, prep,
                        block_rows=block_rows)


def init_params(key, d_model, covariate_dim, output_dim, hidden_dim=256, ffn_hidden=None):
    """Deterministic synthetic parameters (shapes follow the torch module __init__)."""
    if ffn_hidden is None:
        ffn_hidden = hidden_dim  # FFN(2*hidden_dim, hidden_dim, output_dim)
    ks = jax.random.split(key, 8)
    f32 = jnp.float32
    # stored pre-transposed: (in_features, out_features)
    return {
        "W_out": jax.random.normal(ks[0], (d_model, hidden_dim), f32) * 0.05,
        "b_out": jax.random.normal(ks[1], (1, hidden_dim), f32) * 0.05,
        "W_cov": jax.random.normal(ks[2], (covariate_dim, hidden_dim), f32) * 0.05,
        "b_cov": jax.random.normal(ks[3], (1, hidden_dim), f32) * 0.05,
        "W1":    jax.random.normal(ks[4], (2 * hidden_dim, ffn_hidden), f32) * 0.05,
        "b1":    jax.random.normal(ks[5], (1, ffn_hidden), f32) * 0.05,
        "W2":    jax.random.normal(ks[6], (ffn_hidden, output_dim), f32) * 0.05,
        "b2":    jax.random.normal(ks[7], (1, output_dim), f32) * 0.05,
    }


def _reference(hs, cov, orig, p):
    # pure-JAX f32 reference of the same forward (matches torch semantics)
    h = jnp.maximum(hs @ p["W_out"] + p["b_out"], 0.0)
    c = jnp.maximum(cov @ p["W_cov"] + p["b_cov"], 0.0)
    cat = jnp.concatenate([h, c], axis=-1)
    z = jnp.maximum(cat @ p["W1"] + p["b1"], 0.0)
    adj = z @ p["W2"] + p["b2"]
    return orig + adj


if __name__ == "__main__":
    d_model, covariate_dim, output_dim, hidden_dim = 32, 16, 8, 256
    B, S = 2, 8

    key = jax.random.PRNGKey(0)
    k_hs, k_cov, k_orig, k_p = jax.random.split(key, 4)
    hidden_states = jax.random.normal(k_hs, (B, S, d_model), jnp.float32)
    future_covariates = jax.random.normal(k_cov, (B, S, covariate_dim), jnp.float32)
    original_outputs = jax.random.normal(k_orig, (B, S, output_dim), jnp.float32)

    params = init_params(k_p, d_model, covariate_dim, output_dim, hidden_dim)
    ref = _reference(hidden_states, future_covariates, original_outputs, params)

    # f32 compute path (tight tolerance)
    prep_f32 = jax.tree_util.tree_map(jax.block_until_ready,
                                      prepare_params(params, jnp.float32))
    out_f32 = output_injection_block(hidden_states, future_covariates, original_outputs,
                                     prep_f32)
    out_f32 = jax.block_until_ready(out_f32)
    assert out_f32.shape == original_outputs.shape
    assert jnp.allclose(out_f32, ref, atol=2e-3, rtol=2e-3), "f32 path mismatch vs reference"

    # bf16 compute path (f32 accumulation; relaxed tolerance)
    prep_bf16 = jax.tree_util.tree_map(jax.block_until_ready,
                                       prepare_params(params, jnp.bfloat16))
    out_bf16 = output_injection_block(hidden_states, future_covariates, original_outputs,
                                      prep_bf16)
    out_bf16 = jax.block_until_ready(out_bf16)
    assert out_bf16.shape == original_outputs.shape
    assert jnp.allclose(out_bf16, ref, atol=5e-2, rtol=5e-2), "bf16 path mismatch vs reference"

    print("KERNEL_OK")
</pallas_src>

<mosaic_0001>
module attributes {stable_mosaic.version = 11 : i64} {
  func.func @_oib_kernel(%arg0: i32, %arg1: memref<16x32xf32, #tpu.memory_space<vmem>>, %arg2: memref<16x16xf32, #tpu.memory_space<vmem>>, %arg3: memref<16x8xf32, #tpu.memory_space<vmem>>, %arg4: memref<32x256xf32, #tpu.memory_space<vmem>>, %arg5: memref<1x256xf32, #tpu.memory_space<vmem>>, %arg6: memref<16x256xf32, #tpu.memory_space<vmem>>, %arg7: memref<1x256xf32, #tpu.memory_space<vmem>>, %arg8: memref<256x256xf32, #tpu.memory_space<vmem>>, %arg9: memref<256x256xf32, #tpu.memory_space<vmem>>, %arg10: memref<1x256xf32, #tpu.memory_space<vmem>>, %arg11: memref<256x8xf32, #tpu.memory_space<vmem>>, %arg12: memref<1x8xf32, #tpu.memory_space<vmem>>, %arg13: memref<16x8xf32, #tpu.memory_space<vmem>>) attributes {dimension_semantics = [#tpu.dimension_semantics<parallel>], iteration_bounds = array<i64: 1>, scalar_prefetch = 0 : i64, scratch_operands = 0 : i64, tpu.core_type = #tpu.core_type<tc>, window_params = [{transform_indices = @transform_0, window_bounds = array<i64: 16, 32>}, {transform_indices = @transform_1, window_bounds = array<i64: 16, 16>}, {transform_indices = @transform_2, window_bounds = array<i64: 16, 8>}, {pipeline_mode = #tpu.pipeline_mode<synchronous>, transform_indices = @transform_3, window_bounds = array<i64: 32, 256>}, {pipeline_mode = #tpu.pipeline_mode<synchronous>, transform_indices = @transform_4, window_bounds = array<i64: 1, 256>}, {pipeline_mode = #tpu.pipeline_mode<synchronous>, transform_indices = @transform_5, window_bounds = array<i64: 16, 256>}, {pipeline_mode = #tpu.pipeline_mode<synchronous>, transform_indices = @transform_6, window_bounds = array<i64: 1, 256>}, {pipeline_mode = #tpu.pipeline_mode<synchronous>, transform_indices = @transform_7, window_bounds = array<i64: 256, 256>}, {pipeline_mode = #tpu.pipeline_mode<synchronous>, transform_indices = @transform_8, window_bounds = array<i64: 256, 256>}, {pipeline_mode = #tpu.pipeline_mode<synchronous>, transform_indices = @transform_9, window_bounds = array<i64: 1, 256>}, {pipeline_mode = #tpu.pipeline_mode<synchronous>, transform_indices = @transform_10, window_bounds = array<i64: 256, 8>}, {pipeline_mode = #tpu.pipeline_mode<synchronous>, transform_indices = @transform_11, window_bounds = array<i64: 1, 8>}, {transform_indices = @transform_12, window_bounds = array<i64: 16, 8>}]} {
    %c0 = arith.constant 0 : index
    %c0_0 = arith.constant 0 : index
    %0 = vector.load %arg1[%c0, %c0_0] : memref<16x32xf32, #tpu.memory_space<vmem>>, vector<16x32xf32>
    %c0_1 = arith.constant 0 : index
    %c0_2 = arith.constant 0 : index
    %1 = vector.load %arg4[%c0_1, %c0_2] : memref<32x256xf32, #tpu.memory_space<vmem>>, vector<32x256xf32>
    %cst = arith.constant dense<0.000000e+00> : vector<16x256xf32>
    %2 = tpu.matmul %0, %1, %cst {dimension_numbers = #tpu.dot_dimension_numbers<[1], [0], [0], [1], [0, 0, 1, 1], [], []>} : vector<16x32xf32>, vector<32x256xf32>, vector<16x256xf32> -> vector<16x256xf32>
    %c0_3 = arith.constant 0 : index
    %c0_4 = arith.constant 0 : index
    %3 = vector.load %arg5[%c0_3, %c0_4] : memref<1x256xf32, #tpu.memory_space<vmem>>, vector<1x256xf32>
    %4 = vector.broadcast %3 : vector<1x256xf32> to vector<16x256xf32>
    %5 = arith.addf %2, %4 : vector<16x256xf32>
    %cst_5 = arith.constant 0.000000e+00 : f32
    %6 = vector.broadcast %cst_5 : f32 to vector<16x256xf32>
    %7 = arith.maximumf %5, %6 : vector<16x256xf32>
    %c0_6 = arith.constant 0 : index
    %c0_7 = arith.constant 0 : index
    %8 = vector.load %arg2[%c0_6, %c0_7] : memref<16x16xf32, #tpu.memory_space<vmem>>, vector<16x16xf32>
    %c0_8 = arith.constant 0 : index
    %c0_9 = arith.constant 0 : index
    %9 = vector.load %arg6[%c0_8, %c0_9] : memref<16x256xf32, #tpu.memory_space<vmem>>, vector<16x256xf32>
    %cst_10 = arith.constant dense<0.000000e+00> : vector<16x256xf32>
    %10 = tpu.matmul %8, %9, %cst_10 {dimension_numbers = #tpu.dot_dimension_numbers<[1], [0], [0], [1], [0, 0, 1, 1], [], []>} : vector<16x16xf32>, vector<16x256xf32>, vector<16x256xf32> -> vector<16x256xf32>
    %c0_11 = arith.constant 0 : index
    %c0_12 = arith.constant 0 : index
    %11 = vector.load %arg7[%c0_11, %c0_12] : memref<1x256xf32, #tpu.memory_space<vmem>>, vector<1x256xf32>
    %12 = vector.broadcast %11 : vector<1x256xf32> to vector<16x256xf32>
    %13 = arith.addf %10, %12 : vector<16x256xf32>
    %cst_13 = arith.constant 0.000000e+00 : f32
    %14 = vector.broadcast %cst_13 : f32 to vector<16x256xf32>
    %15 = arith.maximumf %13, %14 : vector<16x256xf32>
    %c0_14 = arith.constant 0 : index
    %c0_15 = arith.constant 0 : index
    %16 = vector.load %arg8[%c0_14, %c0_15] : memref<256x256xf32, #tpu.memory_space<vmem>>, vector<256x256xf32>
    %cst_16 = arith.constant dense<0.000000e+00> : vector<16x256xf32>
    %17 = tpu.matmul %7, %16, %cst_16 {dimension_numbers = #tpu.dot_dimension_numbers<[1], [0], [0], [1], [0, 0, 1, 1], [], []>} : vector<16x256xf32>, vector<256x256xf32>, vector<16x256xf32> -> vector<16x256xf32>
    %c0_17 = arith.constant 0 : index
    %c0_18 = arith.constant 0 : index
    %18 = vector.load %arg9[%c0_17, %c0_18] : memref<256x256xf32, #tpu.memory_space<vmem>>, vector<256x256xf32>
    %cst_19 = arith.constant dense<0.000000e+00> : vector<16x256xf32>
    %19 = tpu.matmul %15, %18, %cst_19 {dimension_numbers = #tpu.dot_dimension_numbers<[1], [0], [0], [1], [0, 0, 1, 1], [], []>} : vector<16x256xf32>, vector<256x256xf32>, vector<16x256xf32> -> vector<16x256xf32>
    %20 = arith.addf %17, %19 : vector<16x256xf32>
    %c0_20 = arith.constant 0 : index
    %c0_21 = arith.constant 0 : index
    %21 = vector.load %arg10[%c0_20, %c0_21] : memref<1x256xf32, #tpu.memory_space<vmem>>, vector<1x256xf32>
    %22 = vector.broadcast %21 : vector<1x256xf32> to vector<16x256xf32>
    %23 = arith.addf %20, %22 : vector<16x256xf32>
    %cst_22 = arith.constant 0.000000e+00 : f32
    %24 = vector.broadcast %cst_22 : f32 to vector<16x256xf32>
    %25 = arith.maximumf %23, %24 : vector<16x256xf32>
    %c0_23 = arith.constant 0 : index
    %c0_24 = arith.constant 0 : index
    %26 = vector.load %arg11[%c0_23, %c0_24] : memref<256x8xf32, #tpu.memory_space<vmem>>, vector<256x8xf32>
    %cst_25 = arith.constant dense<0.000000e+00> : vector<16x8xf32>
    %27 = tpu.matmul %25, %26, %cst_25 {dimension_numbers = #tpu.dot_dimension_numbers<[1], [0], [0], [1], [0, 0, 1, 1], [], []>} : vector<16x256xf32>, vector<256x8xf32>, vector<16x8xf32> -> vector<16x8xf32>
    %c0_26 = arith.constant 0 : index
    %c0_27 = arith.constant 0 : index
    %28 = vector.load %arg12[%c0_26, %c0_27] : memref<1x8xf32, #tpu.memory_space<vmem>>, vector<1x8xf32>
    %29 = vector.broadcast %28 : vector<1x8xf32> to vector<16x8xf32>
    %30 = arith.addf %27, %29 : vector<16x8xf32>
    %c0_28 = arith.constant 0 : index
    %c0_29 = arith.constant 0 : index
    %31 = vector.load %arg3[%c0_28, %c0_29] : memref<16x8xf32, #tpu.memory_space<vmem>>, vector<16x8xf32>
    %32 = arith.addf %31, %30 : vector<16x8xf32>
    %c0_30 = arith.constant 0 : index
    %c0_31 = arith.constant 0 : index
    %33 = vector.load %arg13[%c0_30, %c0_31] : memref<16x8xf32, #tpu.memory_space<vmem>>, vector<16x8xf32>
    tpu.vector_store %arg13[%c0_30, %c0_31], %32 {strides = array<i32>} : memref<16x8xf32, #tpu.memory_space<vmem>>, vector<16x8xf32>,
    return
  }
  func.func @transform_0(%arg0: i32) -> (i32, i32) {
    %c0_i32 = arith.constant 0 : i32
    %c0_i32_0 = arith.constant 0 : i32
    return %arg0, %c0_i32 : i32, i32
  }
  func.func @transform_1(%arg0: i32) -> (i32, i32) {
    %c0_i32 = arith.constant 0 : i32
    %c0_i32_0 = arith.constant 0 : i32
    return %arg0, %c0_i32 : i32, i32
  }
  func.func @transform_2(%arg0: i32) -> (i32, i32) {
    %c0_i32 = arith.constant 0 : i32
    %c0_i32_0 = arith.constant 0 : i32
    return %arg0, %c0_i32 : i32, i32
  }
  func.func @transform_3(%arg0: i32) -> (i32, i32) {
    %c0_i32 = arith.constant 0 : i32
    %c0_i32_0 = arith.constant 0 : i32
    %c0_i32_1 = arith.constant 0 : i32
    return %c0_i32, %c0_i32_0 : i32, i32
  }
  func.func @transform_4(%arg0: i32) -> (i32, i32) {
    %c0_i32 = arith.constant 0 : i32
    %c0_i32_0 = arith.constant 0 : i32
    %c0_i32_1 = arith.constant 0 : i32
    return %c0_i32, %c0_i32_0 : i32, i32
  }
  func.func @transform_5(%arg0: i32) -> (i32, i32) {
    %c0_i32 = arith.constant 0 : i32
    %c0_i32_0 = arith.constant 0 : i32
    %c0_i32_1 = arith.constant 0 : i32
    return %c0_i32, %c0_i32_0 : i32, i32
  }
  func.func @transform_6(%arg0: i32) -> (i32, i32) {
    %c0_i32 = arith.constant 0 : i32
    %c0_i32_0 = arith.constant 0 : i32
    %c0_i32_1 = arith.constant 0 : i32
    return %c0_i32, %c0_i32_0 : i32, i32
  }
  func.func @transform_7(%arg0: i32) -> (i32, i32) {
    %c0_i32 = arith.constant 0 : i32
    %c0_i32_0 = arith.constant 0 : i32
    %c0_i32_1 = arith.constant 0 : i32
    return %c0_i32, %c0_i32_0 : i32, i32
  }
  func.func @transform_8(%arg0: i32) -> (i32, i32) {
    %c0_i32 = arith.constant 0 : i32
    %c0_i32_0 = arith.constant 0 : i32
    %c0_i32_1 = arith.constant 0 : i32
    return %c0_i32, %c0_i32_0 : i32, i32
  }
  func.func @transform_9(%arg0: i32) -> (i32, i32) {
    %c0_i32 = arith.constant 0 : i32
    %c0_i32_0 = arith.constant 0 : i32
    %c0_i32_1 = arith.constant 0 : i32
    return %c0_i32, %c0_i32_0 : i32, i32
  }
  func.func @transform_10(%arg0: i32) -> (i32, i32) {
    %c0_i32 = arith.constant 0 : i32
    %c0_i32_0 = arith.constant 0 : i32
    %c0_i32_1 = arith.constant 0 : i32
    return %c0_i32, %c0_i32_0 : i32, i32
  }
  func.func @transform_11(%arg0: i32) -> (i32, i32) {
    %c0_i32 = arith.constant 0 : i32
    %c0_i32_0 = arith.constant 0 : i32
    %c0_i32_1 = arith.constant 0 : i32
    return %c0_i32, %c0_i32_0 : i32, i32
  }
  func.func @transform_12(%arg0: i32) -> (i32, i32) {
    %c0_i32 = arith.constant 0 : i32
    %c0_i32_0 = arith.constant 0 : i32
    return %arg0, %c0_i32 : i32, i32
  }
}

</mosaic_0001>

<bundles_post_ra>
// kernel: _oib_forward.1
= control target key start
LH: loop header
LB: loop body
LE: loop exit
PB: predicated region body
PF: predicated region fallthrough
CT: control target
= control target key end

     0   :  { %17 = vsyncpa [#allocation3], 0  ;;  %s1315_s0 = inlined_call_operand.vmem [shape: f32[16,32], index: 0, kind: input, shape index: {}]   ;;  %s1316_s1 = inlined_call_operand.vmem [shape: f32[16,16], index: 1, kind: input, shape index: {}]   ;;  %s1317_s2 = inlined_call_operand.vmem [shape: f32[16,8], index: 2, kind: input, shape index: {}]   ;;  %s1318_s3 = inlined_call_operand.vmem [shape: f32[32,256], index: 3, kind: input, shape index: {}]   ;;  %s1319_s4 = inlined_call_operand.vmem [shape: f32[1,256], index: 4, kind: input, shape index: {}]   ;;  %s1320_s5 = inlined_call_operand.vmem [shape: f32[16,256], index: 5, kind: input, shape index: {}]   ;;  %s1321_s6 = inlined_call_operand.vmem [shape: f32[1,256], index: 6, kind: input, shape index: {}]   ;;  %s1322_s7 = inlined_call_operand.hbm [shape: f32[256,256], index: 7, kind: input, shape index: {}]   ;;  %s1323_s8 = inlined_call_operand.hbm [shape: f32[256,256], index: 8, kind: input, shape index: {}]   ;;  %s1324_s9 = inlined_call_operand.vmem [shape: f32[1,256], index: 9, kind: input, shape index: {}]   ;;  %s1325_s10 = inlined_call_operand.vmem [shape: f32[256,8], index: 10, kind: input, shape index: {}]   ;;  %s1326_s11 = inlined_call_operand.vmem [shape: f32[1,8], index: 11, kind: input, shape index: {}]   ;;  %s1327_s12 = inlined_call_operand.hbm [shape: f32[16,8], index: 12, kind: output, shape index: {}]  }
   0x1   :  { %18 = vsyncpa [#allocation6], 0 }
   0x2   :  { %19 = vsyncpa [#allocation4], 0  ;;  %s1026_s21 = smov [#allocation2]   ;;  %s954_s25 = scalar_lea.hbm %s1322_s7, 8192 }
   0x3   :  { %s39_s22 = sshll.u32 %s1026_s21, 4  ;;  %p955_p0 = scmp.ne.s32.totalorder %s1322_s7, %s954_s25  ;;  %s40_s22 = int_to_ptr.vmem [resolvable:$true] %s39_s22 }
   0x4   :  { %p958_p1 = scmp.lt.u32.totalorder %s954_s25, %s1322_s7 }
   0x6   :  { %p960_p2 = pnand %p958_p1, %p955_p0 }
   0x8   :  { %963 = shalt.err (!%p960_p2)
}
   0x9   :  { %s964_s30 = scalar_lea.vmem %s40_s22, 8192  ;;  %p969_p4 = scmp.lt.s32.totalorder %s40_s22, %s40_s22 }
   0xa   :  { %p965_p3 = scmp.ne.s32.totalorder %s40_s22, %s964_s30  ;;  %p970_p5 = scmp.lt.s32.totalorder %s964_s30, %s964_s30 }
   0xc   :  { %p971_p6 = por %p970_p5, %p969_p4 }
   0xe   :  { %p972_p7 = pnand %p971_p6, %p965_p3 }
  0x10   :  { %975 = shalt.err (!%p972_p7)
}
  0x11   :  { %s1027_s13 = smov 256   ;;  %s1028_s14 = smov 16  }
  0x12   :  { %45 = dma.hbm_to_vmem [thread:$0]  %s1322_s7, 8192, %s40_s22, [#allocation3], %s1027_s13, %s1027_s13, %s1028_s14  }
  0x13   :  { %s1029_s17 = smov [#allocation5]   ;;  %s976_s21 = scalar_lea.hbm %s1323_s8, 8192 }
  0x14   :  { %s51_s18 = sshll.u32 %s1029_s17, 4  ;;  %p977_p8 = scmp.ne.s32.totalorder %s1323_s8, %s976_s21  ;;  %s52_s18 = int_to_ptr.vmem [resolvable:$true] %s51_s18 }
  0x15   :  { %p980_p9 = scmp.lt.u32.totalorder %s976_s21, %s1323_s8 }
  0x17   :  { %p982_p10 = pnand %p980_p9, %p977_p8 }
  0x19   :  { %985 = shalt.err (!%p982_p10)
}
  0x1a   :  { %s986_s27 = scalar_lea.vmem %s52_s18, 8192  ;;  %p991_p12 = scmp.lt.s32.totalorder %s52_s18, %s52_s18 }
  0x1b   :  { %p987_p11 = scmp.ne.s32.totalorder %s52_s18, %s986_s27  ;;  %p992_p13 = scmp.lt.s32.totalorder %s986_s27, %s986_s27 }
  0x1d   :  { %p993_p0 = por %p992_p13, %p991_p12 }
  0x1f   :  { %p994_p1 = pnand %p993_p0, %p987_p11 }
  0x21   :  { %997 = shalt.err (!%p994_p1)
}
  0x22   :  { %57 = dma.hbm_to_vmem [thread:$0]  %s1323_s8, 8192, %s52_s18, [#allocation6], %s1027_s13, %s1027_s13, %s1028_s14  }
  0x23   :  { %1020 = dma.done.wait [#allocation3], 8192  }
  0x24   :  { %1021 = vsyncadd [#allocation3], 4294959104 }
  0x25   :  { %1022 = dma.done.wait [#allocation6], 8192  }
  0x26   :  { %1023 = vsyncadd [#allocation6], 4294959104  ;;  %v1030_v0 = vmov 0.0   ;;  %v73_v1 = vld [vmem:[%s1318_s3 + $0x8] sm:$0xff]  ;;  %v75_v2 = vld [vmem:[%s1318_s3 + $0x18] sm:$0xff]  ;;  %vm92_vm0 = vcmask 261120  }
  0x27   :  { %163 = vmatprep.mubr.f32.mxu1 %v1030_v0  ;;  %v72_v3 = vld [vmem:[%s1318_s3] sm:$0xff]  ;;  %v770_v4 = vpack.c.bf16 %v75_v2, %v73_v1  ;;  %v74_v5 = vld [vmem:[%s1318_s3 + $0x10] sm:$0xff]  ;;  %v77_v6 = vld [vmem:[%s1318_s3 + $0x28] sm:$0xff]  ;;  %vm198_vm1 = vcmask 130048   ;;  %vm706_vm2 = vcmask 64512  }
  0x28   :  { %v79_v7 = vld [vmem:[%s1318_s3 + $0x38] sm:$0xff]  ;;  %v772_v8 = vpack.c.bf16 %v74_v5, %v72_v3  ;;  %v76_v10 = vld [vmem:[%s1318_s3 + $0x20] sm:$0xff]  ;;  %v78_v11 = vld [vmem:[%s1318_s3 + $0x30] sm:$0xff] }
  0x29   :  { %v774_v9 = vpack.c.bf16 %v79_v7, %v77_v6  ;;  %771 = vmatprep.subr.bf16.mxu1 %v770_v4  ;;  %v183_v12 = vld [vmem:[%s1320_s5 + $0x8] sm:$0xff]  ;;  %v185_v13 = vld [vmem:[%s1320_s5 + $0x18] sm:$0xff]  ;;  %v776_v14 = vpack.c.bf16 %v78_v11, %v76_v10  ;;  %v182_v16 = vld [vmem:[%s1320_s5] sm:$0xff] }
  0x2a   :  { %773 = vmatpush1.bf16.msra.mxu1 %v772_v8  ;;  %v778_v15 = vpack.c.bf16 %v185_v13, %v183_v12  ;;  %v184_v17 = vld [vmem:[%s1320_s5 + $0x10] sm:$0xff]  ;;  %v287_v18 = vld [vmem:[#allocation2 + $0x8] sm:$0xff]  ;;  %v289_v19 = vld [vmem:[#allocation2 + $0x18] sm:$0xff]  ;;  %s1031_s5 = smov [#allocation7]  }
  0x2b   :  { %775 = vmatprep.subr.bf16.mxu1 %v774_v9  ;;  %v70_v20 = vld [vmem:[%s1315_s0] sm:$0xff]  ;;  %v780_v21 = vpack.c.bf16 %v184_v17, %v182_v16  ;;  %v351_v22 = vld [vmem:[#allocation5 + $0x8] sm:$0xff]  ;;  %v353_v23 = vld [vmem:[#allocation5 + $0x18] sm:$0xff]  ;;  %v846_v24 = vpack.c.bf16 %v289_v19, %v287_v18  ;;  %s714_s17 = sshll.u32 %s1031_s5, 4  ;;  %s715_s17 = int_to_ptr.vmem [resolvable:$true] %s714_s17 }
  0x2c   :  { %v782_v25 = vpack.c.bf16 %v353_v23, %v351_v22  ;;  %v350_v26 = vld [vmem:[#allocation5] sm:$0xff]  ;;  %v352_v27 = vld [vmem:[#allocation5 + $0x10] sm:$0xff]  ;;  %v355_v29 = vld [vmem:[#allocation5 + $0x28] sm:$0xff]  ;;  %p1003_p3 = scmp.lt.s32.totalorder %s715_s17, %s715_s17 }
  0x2d   :  { %v784_v28 = vpack.c.bf16 %v352_v27, %v350_v26  ;;  %v71_v30 = vld [vmem:[%s1315_s0 + $0x8] sm:$0xff]  ;;  %v357_v31 = vld [vmem:[#allocation5 + $0x38] sm:$0xff]  ;;  %v286_v32 = vld [vmem:[#allocation2] sm:$0xff] }
  0x2e   :  { %777 = vmatpush1.bf16.msra.mxu1 %v776_v14  ;;  %783 = vmatprep.subr.bf16.mxu0 %v782_v25  ;;  %v786_v33 = vpack.c.bf16 %v357_v31, %v355_v29  ;;  %v354_v34 = vld [vmem:[#allocation5 + $0x20] sm:$0xff]  ;;  %v356_v35 = vld [vmem:[#allocation5 + $0x30] sm:$0xff]  ;;  %v359_v38 = vld [vmem:[#allocation5 + $0x48] sm:$0xff] }
  0x2f   :  { %779 = vmatprep.subr.bf16.mxu1 %v778_v15  ;;  %v288_v36 = vld [vmem:[#allocation2 + $0x10] sm:$0xff]  ;;  %785 = vmatpush1.bf16.msra.mxu0 %v784_v28  ;;  %v788_v37 = vpack.c.bf16 %v356_v35, %v354_v34  ;;  %v361_v39 = vld [vmem:[#allocation5 + $0x58] sm:$0xff]  ;;  %v291_v40 = vld [vmem:[#allocation2 + $0x28] sm:$0xff] }
  0x30   :  { %v293_v41 = vld [vmem:[#allocation2 + $0x38] sm:$0xff]  ;;  %787 = vmatprep.subr.bf16.mxu0 %v786_v33  ;;  %v790_v42 = vpack.c.bf16 %v361_v39, %v359_v38  ;;  %v358_v43 = vld [vmem:[#allocation5 + $0x40] sm:$0xff]  ;;  %v360_v44 = vld [vmem:[#allocation5 + $0x50] sm:$0xff]  ;;  %v848_v46 = vpack.c.bf16 %v288_v36, %v286_v32 }
  0x31   :  { %727 = vmatmul.mubr.msk.f32.vlgmr.msra.gmra.mrb[0].mxu1 %vm92_vm0, %v70_v20  ;;  %v180_v45 = vld [vmem:[%s1316_s1] sm:$0xff]  ;;  %v363_v47 = vld [vmem:[#allocation5 + $0x68] sm:$0xff]  ;;  %v365_v48 = vld [vmem:[#allocation5 + $0x78] sm:$0xff]  ;;  %v850_v49 = vpack.c.bf16 %v293_v41, %v291_v40  ;;  %v792_v53 = vpack.c.bf16 %v360_v44, %v358_v43 }
  0x32   :  { %781 = vmatpush1.bf16.msra.mxu1 %v780_v21  ;;  %169 = vmatprep.mubr.f32.mxu1 %v1030_v0  ;;  %v290_v50 = vld [vmem:[#allocation2 + $0x20] sm:$0xff]  ;;  %v292_v51 = vld [vmem:[#allocation2 + $0x30] sm:$0xff]  ;;  %v295_v52 = vld [vmem:[#allocation2 + $0x48] sm:$0xff]  ;;  %v794_v55 = vpack.c.bf16 %v365_v48, %v363_v47 }
  0x33   :  { %847 = vmatprep.subr.bf16.mxu1 %v846_v24  ;;  %789 = vmatpush1.bf16.msra.mxu0 %v788_v37  ;;  %v297_v54 = vld [vmem:[#allocation2 + $0x58] sm:$0xff]  ;;  %v362_v56 = vld [vmem:[#allocation5 + $0x60] sm:$0xff]  ;;  %v364_v57 = vld [vmem:[#allocation5 + $0x70] sm:$0xff]  ;;  %v852_v61 = vpack.c.bf16 %v292_v51, %v290_v50 }
  0x34   :  { %791 = vmatprep.subr.bf16.mxu0 %v790_v42  ;;  %v367_v58 = vld [vmem:[#allocation5 + $0x88] sm:$0xff]  ;;  %v369_v59 = vld [vmem:[#allocation5 + $0x98] sm:$0xff]  ;;  %v854_v62 = vpack.c.bf16 %v297_v54, %v295_v52  ;;  %v294_v63 = vld [vmem:[#allocation2 + $0x40] sm:$0xff]  ;;  %v796_v3 = vpack.c.bf16 %v364_v57, %v362_v56 }
  0x35   :  { %728 = vmatmul.mubr.msk.f32.gmra.mrb[2].mxu1 %vm92_vm0, %v71_v30  ;;  %v181_v60 = vld [vmem:[%s1316_s1 + $0x8] sm:$0xff]  ;;  %v296_v1 = vld [vmem:[#allocation2 + $0x50] sm:$0xff]  ;;  %v301_v4 = vld [vmem:[#allocation2 + $0x78] sm:$0xff]  ;;  %v798_v5 = vpack.c.bf16 %v369_v59, %v367_v58 }
  0x36   :  { %269 = vmatprep.mubr.f32.mxu1 %v1030_v0  ;;  %v299_v2 = vld [vmem:[#allocation2 + $0x68] sm:$0xff]  ;;  %v366_v6 = vld [vmem:[#allocation5 + $0x80] sm:$0xff]  ;;  %v368_v7 = vld [vmem:[#allocation5 + $0x90] sm:$0xff]  ;;  %v856_v9 = vpack.c.bf16 %v296_v1, %v294_v63 }
  0x37   :  { %793 = vmatpush1.bf16.msra.mxu0 %v792_v53  ;;  %v373_v8 = vld [vmem:[#allocation5 + $0xb8] sm:$0xff]  ;;  %v858_v10 = vpack.c.bf16 %v301_v4, %v299_v2  ;;  %v298_v11 = vld [vmem:[#allocation2 + $0x60] sm:$0xff]  ;;  %v300_v12 = vld [vmem:[#allocation2 + $0x70] sm:$0xff]  ;;  %v800_v14 = vpack.c.bf16 %v368_v7, %v366_v6 }
  0x38   :  { %795 = vmatprep.subr.bf16.mxu0 %v794_v55  ;;  %v303_v13 = vld [vmem:[#allocation2 + $0x88] sm:$0xff]  ;;  %v305_v15 = vld [vmem:[#allocation2 + $0x98] sm:$0xff]  ;;  %v370_v17 = vld [vmem:[#allocation5 + $0xa0] sm:$0xff]  ;;  %v860_v21 = vpack.c.bf16 %v300_v12, %v298_v11 }
  0x39   :  { %729 = vmatmul.mubr.msk.f32.vlgmr.msra.gmra.mrb[4].mxu1 %vm198_vm1, %v180_v45  ;;  %v372_v18 = vld [vmem:[#allocation5 + $0xb0] sm:$0xff]  ;;  %v375_v19 = vld [vmem:[#allocation5 + $0xc8] sm:$0xff]  ;;  %v377_v20 = vld [vmem:[#allocation5 + $0xd8] sm:$0xff]  ;;  %v862_v22 = vpack.c.bf16 %v305_v15, %v303_v13 }
  0x3a   :  { %275 = vmatprep.mubr.f32.mxu1 %v1030_v0  ;;  %849 = vmatpush1.bf16.msra.mxu1 %v848_v46  ;;  %v371_v0 = vld [vmem:[#allocation5 + $0xa8] sm:$0xff]  ;;  %v302_v23 = vld [vmem:[#allocation2 + $0x80] sm:$0xff]  ;;  %v304_v24 = vld [vmem:[#allocation2 + $0x90] sm:$0xff]  ;;  %v804_v26 = vpack.c.bf16 %v372_v18, %v370_v17  ;;  %v806_v28 = vpack.c.bf16 %v377_v20, %v375_v19 }
  0x3b   :  { %851 = vmatprep.subr.bf16.mxu1 %v850_v49  ;;  %797 = vmatpush1.bf16.msra.mxu0 %v796_v3  ;;  %v802_v16 = vpack.c.bf16 %v373_v8, %v371_v0  ;;  %v307_v25 = vld [vmem:[#allocation2 + $0xa8] sm:$0xff]  ;;  %v309_v27 = vld [vmem:[#allocation2 + $0xb8] sm:$0xff]  ;;  %v374_v29 = vld [vmem:[#allocation5 + $0xc0] sm:$0xff]  ;;  %v864_v33 = vpack.c.bf16 %v304_v24, %v302_v23 }
  0x3c   :  { %799 = vmatprep.subr.bf16.mxu0 %v798_v5  ;;  %v376_v30 = vld [vmem:[#allocation5 + $0xd0] sm:$0xff]  ;;  %v379_v31 = vld [vmem:[#allocation5 + $0xe8] sm:$0xff]  ;;  %v381_v32 = vld [vmem:[#allocation5 + $0xf8] sm:$0xff]  ;;  %v866_v34 = vpack.c.bf16 %v309_v27, %v307_v25 }
  0x3d   :  { %730 = vmatmul.mubr.msk.f32.gmra.mrb[6].mxu1 %vm198_vm1, %v181_v60  ;;  %v306_v35 = vld [vmem:[#allocation2 + $0xa0] sm:$0xff]  ;;  %v308_v36 = vld [vmem:[#allocation2 + $0xb0] sm:$0xff]  ;;  %v311_v37 = vld [vmem:[#allocation2 + $0xc8] sm:$0xff]  ;;  %v808_v38 = vpack.c.bf16 %v376_v30, %v374_v29  ;;  %v810_v40 = vpack.c.bf16 %v381_v32, %v379_v31 }
  0x3e   :  { %853 = vmatpush1.bf16.msra.mxu1 %v852_v61  ;;  %v313_v39 = vld [vmem:[#allocation2 + $0xd8] sm:$0xff]  ;;  %v378_v41 = vld [vmem:[#allocation5 + $0xe0] sm:$0xff]  ;;  %v380_v42 = vld [vmem:[#allocation5 + $0xf0] sm:$0xff]  ;;  %v868_v45 = vpack.c.bf16 %v308_v36, %v306_v35 }
  0x3f   :  { %855 = vmatprep.subr.bf16.mxu1 %v854_v62  ;;  %801 = vmatpush1.bf16.msra.mxu0 %v800_v14  ;;  %v383_v43 = vld [vmem:[#allocation5 + $0x108] sm:$0xff]  ;;  %v385_v44 = vld [vmem:[#allocation5 + $0x118] sm:$0xff]  ;;  %v870_v46 = vpack.c.bf16 %v313_v39, %v311_v37  ;;  %v310_v47 = vld [vmem:[#allocation2 + $0xc0] sm:$0xff]  ;;  %v812_v50 = vpack.c.bf16 %v380_v42, %v378_v41 }
  0x40   :  { %803 = vmatprep.subr.bf16.mxu0 %v802_v16  ;;  %v312_v48 = vld [vmem:[#allocation2 + $0xd0] sm:$0xff]  ;;  %v315_v49 = vld [vmem:[#allocation2 + $0xe8] sm:$0xff]  ;;  %v317_v51 = vld [vmem:[#allocation2 + $0xf8] sm:$0xff]  ;;  %v814_v52 = vpack.c.bf16 %v385_v44, %v383_v43 }
  0x41   :  { %v382_v53 = vld [vmem:[#allocation5 + $0x100] sm:$0xff]  ;;  %v384_v54 = vld [vmem:[#allocation5 + $0x110] sm:$0xff]  ;;  %v387_v55 = vld [vmem:[#allocation5 + $0x128] sm:$0xff]  ;;  %v872_v57 = vpack.c.bf16 %v312_v48, %v310_v47  ;;  %v874_v58 = vpack.c.bf16 %v317_v51, %v315_v49 }
  0x42   :  { %857 = vmatpush1.bf16.msra.mxu1 %v856_v9  ;;  %v389_v56 = vld [vmem:[#allocation5 + $0x138] sm:$0xff]  ;;  %v314_v59 = vld [vmem:[#allocation2 + $0xe0] sm:$0xff]  ;;  %v316_v60 = vld [vmem:[#allocation2 + $0xf0] sm:$0xff]  ;;  %v816_v62 = vpack.c.bf16 %v384_v54, %v382_v53 }
  0x43   :  { %859 = vmatprep.subr.bf16.mxu1 %v858_v10  ;;  %805 = vmatpush1.bf16.msra.mxu0 %v804_v26  ;;  %v319_v61 = vld [vmem:[#allocation2 + $0x108] sm:$0xff]  ;;  %v321_v63 = vld [vmem:[#allocation2 + $0x118] sm:$0xff]  ;;  %v818_v1 = vpack.c.bf16 %v389_v56, %v387_v55  ;;  %v386_v2 = vld [vmem:[#allocation5 + $0x120] sm:$0xff]  ;;  %v876_v6 = vpack.c.bf16 %v316_v60, %v314_v59 }
  0x44   :  { %807 = vmatprep.subr.bf16.mxu0 %v806_v28  ;;  %v388_v3 = vld [vmem:[#allocation5 + $0x130] sm:$0xff]  ;;  %v391_v4 = vld [vmem:[#allocation5 + $0x148] sm:$0xff]  ;;  %v393_v5 = vld [vmem:[#allocation5 + $0x158] sm:$0xff]  ;;  %v878_v7 = vpack.c.bf16 %v321_v63, %v319_v61 }
  0x45   :  { %v318_v0 = vld [vmem:[#allocation2 + $0x100] sm:$0xff]  ;;  %v320_v8 = vld [vmem:[#allocation2 + $0x110] sm:$0xff]  ;;  %v323_v9 = vld [vmem:[#allocation2 + $0x128] sm:$0xff]  ;;  %v820_v10 = vpack.c.bf16 %v388_v3, %v386_v2  ;;  %v822_v12 = vpack.c.bf16 %v393_v5, %v391_v4 }
  0x46   :  { %861 = vmatpush1.bf16.msra.mxu1 %v860_v21  ;;  %v325_v11 = vld [vmem:[#allocation2 + $0x138] sm:$0xff]  ;;  %v390_v13 = vld [vmem:[#allocation5 + $0x140] sm:$0xff]  ;;  %v392_v14 = vld [vmem:[#allocation5 + $0x150] sm:$0xff]  ;;  %v880_v17 = vpack.c.bf16 %v320_v8, %v318_v0 }
  0x47   :  { %863 = vmatprep.subr.bf16.mxu1 %v862_v22  ;;  %809 = vmatpush1.bf16.msra.mxu0 %v808_v38  ;;  %v395_v15 = vld [vmem:[#allocation5 + $0x168] sm:$0xff]  ;;  %v397_v16 = vld [vmem:[#allocation5 + $0x178] sm:$0xff]  ;;  %v882_v18 = vpack.c.bf16 %v325_v11, %v323_v9  ;;  %v322_v19 = vld [vmem:[#allocation2 + $0x120] sm:$0xff]  ;;  %v824_v22 = vpack.c.bf16 %v392_v14, %v390_v13 }
  0x48   :  { %811 = vmatprep.subr.bf16.mxu0 %v810_v40  ;;  %v324_v20 = vld [vmem:[#allocation2 + $0x130] sm:$0xff]  ;;  %v327_v21 = vld [vmem:[#allocation2 + $0x148] sm:$0xff]  ;;  %v329_v23 = vld [vmem:[#allocation2 + $0x158] sm:$0xff]  ;;  %v826_v24 = vpack.c.bf16 %v397_v16, %v395_v15 }
  0x49   :  { %v394_v25 = vld [vmem:[#allocation5 + $0x160] sm:$0xff]  ;;  %v396_v26 = vld [vmem:[#allocation5 + $0x170] sm:$0xff]  ;;  %v399_v27 = vld [vmem:[#allocation5 + $0x188] sm:$0xff]  ;;  %v884_v29 = vpack.c.bf16 %v324_v20, %v322_v19  ;;  %v886_v30 = vpack.c.bf16 %v329_v23, %v327_v21 }
  0x4a   :  { %865 = vmatpush1.bf16.msra.mxu1 %v864_v33  ;;  %v401_v28 = vld [vmem:[#allocation5 + $0x198] sm:$0xff]  ;;  %v326_v31 = vld [vmem:[#allocation2 + $0x140] sm:$0xff]  ;;  %v328_v32 = vld [vmem:[#allocation2 + $0x150] sm:$0xff]  ;;  %v828_v33 = vpack.c.bf16 %v396_v26, %v394_v25  ;;  %v82_v26 = vlaneseq }
  0x4b   :  { %867 = vmatprep.subr.bf16.mxu1 %v866_v34  ;;  %813 = vmatpush1.bf16.msra.mxu0 %v812_v50  ;;  %v331_v34 = vld [vmem:[#allocation2 + $0x168] sm:$0xff]  ;;  %v333_v35 = vld [vmem:[#allocation2 + $0x178] sm:$0xff]  ;;  %v830_v36 = vpack.c.bf16 %v401_v28, %v399_v27  ;;  %v888_v37 = vpack.c.bf16 %v328_v32, %v326_v31  ;;  %v330_v39 = vld [vmem:[#allocation2 + $0x160] sm:$0xff] }
  0x4c   :  { %815 = vmatprep.subr.bf16.mxu0 %v814_v52  ;;  %v890_v38 = vpack.c.bf16 %v333_v35, %v331_v34  ;;  %v332_v40 = vld [vmem:[#allocation2 + $0x170] sm:$0xff]  ;;  %v335_v41 = vld [vmem:[#allocation2 + $0x188] sm:$0xff]  ;;  %v337_v42 = vld [vmem:[#allocation2 + $0x198] sm:$0xff]  ;;  %v83_v27 = vshrl.u32 %v82_v26, 7 }
  0x4d   :  { %v892_v43 = vpack.c.bf16 %v332_v40, %v330_v39  ;;  %v894_v44 = vpack.c.bf16 %v337_v42, %v335_v41  ;;  %v339_v47 = vld [vmem:[#allocation2 + $0x1a8] sm:$0xff]  ;;  %v341_v48 = vld [vmem:[#allocation2 + $0x1b8] sm:$0xff]  ;;  %v338_v51 = vld [vmem:[#allocation2 + $0x1a0] sm:$0xff] }
  0x4e   :  { %869 = vmatpush1.bf16.msra.mxu1 %v868_v45  ;;  %v334_v45 = vld [vmem:[#allocation2 + $0x180] sm:$0xff]  ;;  %v898_v50 = vpack.c.bf16 %v341_v48, %v339_v47  ;;  %v340_v52 = vld [vmem:[#allocation2 + $0x1b0] sm:$0xff]  ;;  %v343_v53 = vld [vmem:[#allocation2 + $0x1c8] sm:$0xff]  ;;  %v1185_v28 = vsub.s32 0, %v83_v27 }
  0x4f   :  { %871 = vmatprep.subr.bf16.mxu1 %v870_v46  ;;  %817 = vmatpush1.bf16.msra.mxu0 %v816_v62  ;;  %v336_v46 = vld [vmem:[#allocation2 + $0x190] sm:$0xff]  ;;  %v345_v54 = vld [vmem:[#allocation2 + $0x1d8] sm:$0xff]  ;;  %v900_v55 = vpack.c.bf16 %v340_v52, %v338_v51  ;;  %v342_v59 = vld [vmem:[#allocation2 + $0x1c0] sm:$0xff] }
  0x50   :  { %819 = vmatprep.subr.bf16.mxu0 %v818_v1  ;;  %v896_v49 = vpack.c.bf16 %v336_v46, %v334_v45  ;;  %v902_v56 = vpack.c.bf16 %v345_v54, %v343_v53  ;;  %v344_v61 = vld [vmem:[#allocation2 + $0x1d0] sm:$0xff]  ;;  %v403_v63 = vld [vmem:[#allocation5 + $0x1a8] sm:$0xff]  ;;  %v405_v1 = vld [vmem:[#allocation5 + $0x1b8] sm:$0xff] }
  0x51   :  { %v904_v62 = vpack.c.bf16 %v344_v61, %v342_v59  ;;  %v347_v2 = vld [vmem:[#allocation2 + $0x1e8] sm:$0xff]  ;;  %v834_v3 = vpack.c.bf16 %v405_v1, %v403_v63  ;;  %v349_v4 = vld [vmem:[#allocation2 + $0x1f8] sm:$0xff]  ;;  %v402_v5 = vld [vmem:[#allocation5 + $0x1a0] sm:$0xff] }
  0x52   :  { %873 = vmatpush1.bf16.msra.mxu1 %v872_v57  ;;  %v398_v57 = vld [vmem:[#allocation5 + $0x180] sm:$0xff]  ;;  %v348_v9 = vld [vmem:[#allocation2 + $0x1f0] sm:$0xff]  ;;  %v407_v11 = vld [vmem:[#allocation5 + $0x1c8] sm:$0xff] }
  0x53   :  { %875 = vmatprep.subr.bf16.mxu1 %v874_v58  ;;  %821 = vmatpush1.bf16.msra.mxu0 %v820_v10  ;;  %v400_v58 = vld [vmem:[#allocation5 + $0x190] sm:$0xff]  ;;  %v346_v8 = vld [vmem:[#allocation2 + $0x1e0] sm:$0xff]  ;;  %v589_v52 = vld [vmem:[%s1325_s10 + $0x8] sm:$0xff] }
  0x54   :  { %823 = vmatprep.subr.bf16.mxu0 %v822_v12  ;;  %v832_v60 = vpack.c.bf16 %v400_v58, %v398_v57  ;;  %v908_v10 = vpack.c.bf16 %v348_v9, %v346_v8  ;;  %v409_v12 = vld [vmem:[#allocation5 + $0x1d8] sm:$0xff]  ;;  %v406_v14 = vld [vmem:[#allocation5 + $0x1c0] sm:$0xff]  ;;  %v408_v15 = vld [vmem:[#allocation5 + $0x1d0] sm:$0xff] }
  0x55   :  { %v838_v13 = vpack.c.bf16 %v409_v12, %v407_v11  ;;  %v840_v16 = vpack.c.bf16 %v408_v15, %v406_v14  ;;  %v410_v20 = vld [vmem:[#allocation5 + $0x1e0] sm:$0xff]  ;;  %v412_v21 = vld [vmem:[#allocation5 + $0x1f0] sm:$0xff]  ;;  %v591_v1 = vld [vmem:[%s1325_s10 + $0x18] sm:$0xff] }
  0x56   :  { %877 = vmatpush1.bf16.msra.mxu1 %v876_v6  ;;  %v404_v6 = vld [vmem:[#allocation5 + $0x1b0] sm:$0xff]  ;;  %v604_v23 = vld [vmem:[%s1325_s10 + $0x80] sm:$0xff]  ;;  %v593_v9 = vld [vmem:[%s1325_s10 + $0x28] sm:$0xff] }
  0x57   :  { %879 = vmatprep.subr.bf16.mxu1 %v878_v7  ;;  %825 = vmatpush1.bf16.msra.mxu0 %v824_v22  ;;  %v906_v7 = vpack.c.bf16 %v349_v4, %v347_v2  ;;  %v836_v0 = vpack.c.bf16 %v404_v6, %v402_v5  ;;  %v844_v22 = vpack.c.bf16 %v412_v21, %v410_v20  ;;  %v588_v51 = vld [vmem:[%s1325_s10] sm:$0xff]  ;;  %v606_v54 = vld [vmem:[%s1325_s10 + $0x90] sm:$0xff]  ;;  %v609_v4 = vld [vmem:[%s1325_s10 + $0xa8] sm:$0xff] }
  0x58   :  { %827 = vmatprep.subr.bf16.mxu0 %v826_v24  ;;  %v605_v24 = vld [vmem:[%s1325_s10 + $0x88] sm:$0xff]  ;;  %v912_v58 = vpack.c.bf16 %v589_v52, %v588_v51  ;;  %v590_v63 = vld [vmem:[%s1325_s10 + $0x10] sm:$0xff]  ;;  %v592_v8 = vld [vmem:[%s1325_s10 + $0x20] sm:$0xff] }
  0x59   :  { %v910_v25 = vpack.c.bf16 %v605_v24, %v604_v23  ;;  %v916_v6 = vpack.c.bf16 %v591_v1, %v590_v63  ;;  %v611_v11 = vld [vmem:[%s1325_s10 + $0xb8] sm:$0xff]  ;;  %v920_v12 = vpack.c.bf16 %v593_v9, %v592_v8  ;;  %v594_v14 = vld [vmem:[%s1325_s10 + $0x30] sm:$0xff]  ;;  %v596_v20 = vld [vmem:[%s1325_s10 + $0x40] sm:$0xff] }
  0x5a   :  { %881 = vmatpush1.bf16.msra.mxu1 %v880_v17  ;;  %v411_v17 = vld [vmem:[#allocation5 + $0x1e8] sm:$0xff]  ;;  %v595_v15 = vld [vmem:[%s1325_s10 + $0x38] sm:$0xff]  ;;  %v614_v23 = vld [vmem:[%s1325_s10 + $0xd0] sm:$0xff] }
  0x5b   :  { %883 = vmatprep.subr.bf16.mxu1 %v882_v18  ;;  %829 = vmatpush1.bf16.msra.mxu0 %v828_v33  ;;  %v413_v18 = vld [vmem:[#allocation5 + $0x1f8] sm:$0xff]  ;;  %v597_v21 = vld [vmem:[%s1325_s10 + $0x48] sm:$0xff]  ;;  %v598_v26 = vld [vmem:[%s1325_s10 + $0x50] sm:$0xff] }
  0x5c   :  { %831 = vmatprep.subr.bf16.mxu0 %v830_v36  ;;  %v842_v19 = vpack.c.bf16 %v413_v18, %v411_v17  ;;  %v612_v17 = vld [vmem:[%s1325_s10 + $0xc0] sm:$0xff]  ;;  %v613_v18 = vld [vmem:[%s1325_s10 + $0xc8] sm:$0xff]  ;;  %v615_v24 = vld [vmem:[%s1325_s10 + $0xd8] sm:$0xff] }
  0x5e   :  { %885 = vmatpush1.bf16.msra.mxu1 %v884_v29  ;;  %v80_v29 = vld [vmem:[%s1319_s4] sm:$0x3] }
  0x5f   :  { %887 = vmatprep.subr.bf16.mxu1 %v886_v30  ;;  %833 = vmatpush1.bf16.msra.mxu0 %v832_v60  ;;  %v1190_v30 = vsub.s32 1, %v83_v27  ;;  %v85_v31 = vrot.slane %v80_v29, %v1185_v28  ;;  %v599_v27 = vld [vmem:[%s1325_s10 + $0x58] sm:$0xff] }
  0x60   :  { %835 = vmatprep.subr.bf16.mxu0 %v834_v3  ;;  %v608_v3 = vld [vmem:[%s1325_s10 + $0xa0] sm:$0xff] }
  0x61   :  { %v89_v32 = vrot.slane %v80_v29, %v1190_v30  ;;  %v932_v29 = vpack.c.bf16 %v599_v27, %v598_v26 }
  0x62   :  { %889 = vmatpush1.bf16.msra.mxu1 %v888_v37  ;;  %v186_v37 = vld [vmem:[%s1321_s6] sm:$0x3] }
  0x63   :  { %891 = vmatprep.subr.bf16.mxu1 %v890_v38  ;;  %837 = vmatpush1.bf16.msra.mxu0 %v836_v0  ;;  %v195_v45 = vrot.slane %v186_v37, %v1190_v30  ;;  %v918_v0 = vpack.c.bf16 %v609_v4, %v608_v3 }
  0x64   :  { %839 = vmatprep.subr.bf16.mxu0 %v838_v13 }
  0x66   :  { %893 = vmatpush1.bf16.msra.mxu1 %v892_v43  ;;  %v191_v43 = vrot.slane %v186_v37, %v1185_v28  ;;  %v618_v37 = vld [vmem:[%s1325_s10 + $0xf0] sm:$0xff] }
  0x67   :  { %895 = vmatprep.subr.bf16.mxu1 %v894_v44  ;;  %841 = vmatpush1.bf16.msra.mxu0 %v840_v16  ;;  %v924_v16 = vpack.c.bf16 %v595_v15, %v594_v14 }
  0x68   :  { %843 = vmatprep.subr.bf16.mxu0 %v842_v19  ;;  %v926_v19 = vpack.c.bf16 %v613_v18, %v612_v17 }
  0x6a   :  { %897 = vmatpush1.bf16.msra.mxu1 %v896_v49 }
  0x6b   :  { %899 = vmatprep.subr.bf16.mxu1 %v898_v50  ;;  %845 = vmatpush1.bf16.msra.mxu0 %v844_v22  ;;  %v928_v22 = vpack.c.bf16 %v597_v21, %v596_v20 }
  0x6c   :  { %911 = vmatprep.subr.bf16.mxu0 %v910_v25  ;;  %v930_v25 = vpack.c.bf16 %v615_v24, %v614_v23 }
  0x6e   :  { %901 = vmatpush1.bf16.msra.mxu1 %v900_v55  ;;  %v607_v55 = vld [vmem:[%s1325_s10 + $0x98] sm:$0xff] }
  0x6f   :  { %903 = vmatprep.subr.bf16.mxu1 %v902_v56 }
  0x72   :  { %905 = vmatpush1.bf16.msra.mxu1 %v904_v62  ;;  %v914_v62 = vpack.c.bf16 %v607_v55, %v606_v54 }
  0x73   :  { %907 = vmatprep.subr.bf16.mxu1 %v906_v7 }
  0x76   :  { %909 = vmatpush1.bf16.msra.mxu1 %v908_v10  ;;  %v610_v10 = vld [vmem:[%s1325_s10 + $0xb0] sm:$0xff] }
  0x77   :  { %v922_v13 = vpack.c.bf16 %v611_v11, %v610_v10  ;;  %v703_v10 = vld [vmem:[%s1317_s2 + $0x8] sm:$0xff] }
 0x104   :  { %v165_v33 = vpop.f32.mrb[0].mxu1 }
 0x105   :  { %v166_v34 = vadd.f32 %v165_v33, %v85_v31  ;;  %v167_v35 = vpop.f32.mrb[1].mxu1 }
 0x106   :  { %v168_v36 = vadd.f32 %v167_v35, %v89_v32  ;;  %v601_v35 = vld [vmem:[%s1325_s10 + $0x68] sm:$0xff] }
 0x107   :  { %v176_v40 = vmax.f32 %v166_v34, 0.0  ;;  %v600_v34 = vld [vmem:[%s1325_s10 + $0x60] sm:$0xff] }
 0x108   :  { %v177_v38 = vmax.f32 %v168_v36, 0.0  ;;  %v171_v39 = vpop.f32.mrb[2].mxu1  ;;  %v936_v36 = vpack.c.bf16 %v601_v35, %v600_v34 }
 0x109   :  { %v172_v41 = vadd.f32 %v171_v39, %v85_v31  ;;  %v173_v42 = vpop.f32.mrb[3].mxu1  ;;  %v616_v31 = vld [vmem:[%s1325_s10 + $0xe0] sm:$0xff] }
 0x10a   :  { %v174_v44 = vadd.f32 %v173_v42, %v89_v32  ;;  %555 = vmatprep.mubr.f32.mxu1 %v177_v38  ;;  %v617_v32 = vld [vmem:[%s1325_s10 + $0xe8] sm:$0xff]  ;;  %v619_v38 = vld [vmem:[%s1325_s10 + $0xf8] sm:$0xff] }
 0x10b   :  { %556 = vmatmul.mubr.f32.vlgmr.msra.gmra.mrb[8].mxu1 %v176_v40  ;;  %v178_v48 = vmax.f32 %v172_v41, 0.0  ;;  %v934_v33 = vpack.c.bf16 %v617_v32, %v616_v31  ;;  %v938_v39 = vpack.c.bf16 %v619_v38, %v618_v37  ;;  %v602_v40 = vld [vmem:[%s1325_s10 + $0x70] sm:$0xff]  ;;  %v603_v41 = vld [vmem:[%s1325_s10 + $0x78] sm:$0xff] }
 0x10c   :  { %v179_v46 = vmax.f32 %v174_v44, 0.0  ;;  %v271_v47 = vpop.f32.mrb[4].mxu1  ;;  %v940_v42 = vpack.c.bf16 %v603_v41, %v602_v40 }
 0x10d   :  { %v272_v49 = vadd.f32 %v271_v47, %v191_v43  ;;  %v273_v50 = vpop.f32.mrb[5].mxu1 }
 0x10e   :  { %561 = vmatprep.mubr.f32.mxu1 %v179_v46  ;;  %v274_v53 = vadd.f32 %v273_v50, %v195_v45  ;;  %v568_v46 = vld [vmem:[%s1324_s9] sm:$0x3] }
 0x10f   :  { %562 = vmatmul.mubr.f32.gmra.mrb[10].mxu1 %v178_v48  ;;  %v282_v59 = vmax.f32 %v272_v49, 0.0  ;;  %v573_v48 = vrot.slane %v568_v46, %v1185_v28  ;;  %v577_v50 = vrot.slane %v568_v46, %v1190_v30 }
 0x110   :  { %v277_v56 = vpop.f32.mrb[6].mxu1  ;;  %v283_v57 = vmax.f32 %v274_v53, 0.0 }
 0x111   :  { %v278_v60 = vadd.f32 %v277_v56, %v191_v43  ;;  %v279_v61 = vpop.f32.mrb[7].mxu1 }
 0x112   :  { %v280_v2 = vadd.f32 %v279_v61, %v195_v45  ;;  %478 = vmatprep.mubr.f32.mxu0 %v283_v57 }
 0x113   :  { %479 = vmatmul.mubr.f32.vlgmr.msra.gmra.mrb[0].mxu0 %v282_v59  ;;  %v284_v7 = vmax.f32 %v278_v60, 0.0 }
 0x114   :  { %v285_v5 = vmax.f32 %v280_v2, 0.0  ;;  %913 = vmatpush3.bf16.msra.mxu0 %v912_v58  ;;  %v731_v2 = vld [vmem:[%s1326_s11] ss:$0 sm:$0xff]  ;;  %s998_s11 = scalar_lea.vmem %s715_s17, 256 }
 0x115   :  { %915 = vmatprep.subr.bf16.mxu0 %v914_v62  ;;  %p999_p2 = scmp.ne.s32.totalorder %s715_s17, %s998_s11  ;;  %p1004_p4 = scmp.lt.s32.totalorder %s998_s11, %s998_s11 }
 0x116   :  { %484 = vmatprep.mubr.f32.mxu0 %v285_v5  ;;  %v702_v5 = vld [vmem:[%s1317_s2] sm:$0xff] }
 0x117   :  { %485 = vmatmul.mubr.f32.gmra.mrb[2].mxu0 %v284_v7  ;;  %p1005_p5 = por %p1004_p4, %p1003_p3 }
 0x118   :  { %917 = vmatpush3.bf16.msra.mxu0 %v916_v6 }
 0x119   :  { %919 = vmatprep.subr.bf16.mxu0 %v918_v0  ;;  %p1006_p6 = pnand %p1005_p5, %p999_p2 }
 0x11c   :  { %921 = vmatpush3.bf16.msra.mxu0 %v920_v12 }
 0x11d   :  { %923 = vmatprep.subr.bf16.mxu0 %v922_v13 }
 0x120   :  { %925 = vmatpush3.bf16.msra.mxu0 %v924_v16 }
 0x121   :  { %927 = vmatprep.subr.bf16.mxu0 %v926_v19 }
 0x124   :  { %929 = vmatpush3.bf16.msra.mxu0 %v928_v22 }
 0x125   :  { %931 = vmatprep.subr.bf16.mxu0 %v930_v25 }
 0x128   :  { %933 = vmatpush3.bf16.msra.mxu0 %v932_v29 }
 0x129   :  { %935 = vmatprep.subr.bf16.mxu0 %v934_v33 }
 0x12c   :  { %937 = vmatpush3.bf16.msra.mxu0 %v936_v36 }
 0x12d   :  { %939 = vmatprep.subr.bf16.mxu0 %v938_v39 }
 0x130   :  { %941 = vmatpush3.bf16.msra.mxu0 %v940_v42 }
 0x1de   :  { %v557_v43 = vpop.f32.mrb[8].mxu1 }
 0x1df   :  { %v559_v44 = vpop.f32.mrb[9].mxu1 }
 0x1e2   :  { %v563_v45 = vpop.f32.mrb[10].mxu1 }
 0x1e3   :  { %v565_v47 = vpop.f32.mrb[11].mxu1 }
 0x1e6   :  { %v480_v49 = vpop.f32.mrb[0].mxu0 }
 0x1e7   :  { %v558_v51 = vadd.f32 %v557_v43, %v480_v49  ;;  %v482_v52 = vpop.f32.mrb[1].mxu0 }
 0x1e8   :  { %v560_v53 = vadd.f32 %v559_v44, %v482_v52 }
 0x1e9   :  { %v580_v54 = vadd.f32 %v573_v48, %v558_v51 }
 0x1ea   :  { %v581_v55 = vadd.f32 %v577_v50, %v560_v53  ;;  %v486_v56 = vpop.f32.mrb[2].mxu0 }
 0x1eb   :  { %v564_v57 = vadd.f32 %v563_v45, %v486_v56  ;;  %v488_v58 = vpop.f32.mrb[3].mxu0  ;;  %v584_v61 = vmax.f32 %v580_v54, 0.0 }
 0x1ec   :  { %v585_v59 = vmax.f32 %v581_v55, 0.0  ;;  %v566_v60 = vadd.f32 %v565_v47, %v488_v58 }
 0x1ed   :  { %v582_v62 = vadd.f32 %v573_v48, %v564_v57 }
 0x1ee   :  { %v583_v63 = vadd.f32 %v577_v50, %v566_v60  ;;  %691 = vmatprep.mubr.f32.mxu0 %v585_v59 }
 0x1ef   :  { %692 = vmatmul.mubr.f32.vlgmr.msra.gmra.mrb[4].mxu0 %v584_v61  ;;  %v586_v28 = vmax.f32 %v582_v62, 0.0 }
 0x1f0   :  { %v587_v1 = vmax.f32 %v583_v63, 0.0 }
 0x1f2   :  { %696 = vmatprep.mubr.f32.mxu0 %v587_v1 }
 0x1f3   :  { %697 = vmatmul.mubr.f32.gmra.mrb[6].mxu0 %v586_v28 }
 0x2c2   :  { %v764_v30 = vpop.f32.mrb[4].mxu0 }
 0x2c3   :  { %v765_v3 = vpop.f32.mrb[5].mxu0 }
 0x2c4   :  { %v766_v4 = vadd.f32 %v765_v3, %v764_v30 }
 0x2c6   :  { %v694_v6 = vadd.f32 %v766_v4, %v731_v2  ;;  %v767_v7 = vpop.f32.mrb[6].mxu0 }
 0x2c7   :  { %v768_v0 = vpop.f32.mrb[7].mxu0 }
 0x2c8   :  { %v704_v8 = vadd.f32 %v702_v5, %v694_v6  ;;  %v769_v9 = vadd.f32 %v768_v0, %v767_v7 }
 0x2ca   :  { %v699_v11 = vadd.f32 %v769_v9, %v731_v2  ;;  %707 = vst.msk [vmem:[#allocation7] sm:$0xff] %vm706_vm2, %v704_v8 }
 0x2cc   :  { %v705_v12 = vadd.f32 %v703_v10, %v699_v11 }
 0x2ce   :  { %708 = vst.msk [vmem:[#allocation7 + $0x8] sm:$0xff] %vm706_vm2, %v705_v12 }
 0x2cf   :  { %1009 = shalt.err (!%p1006_p6)
}
 0x2d0   :  { %s1010_s1 = scalar_lea.hbm %s1327_s12, 256 }
 0x2d1   :  { %p1011_p7 = scmp.ne.s32.totalorder %s1327_s12, %s1010_s1  ;;  %p1014_p8 = scmp.lt.u32.totalorder %s1010_s1, %s1327_s12 }
 0x2d3   :  { %p1016_p9 = pnand %p1014_p8, %p1011_p7 }
 0x2d5   :  { %1019 = shalt.err (!%p1016_p9)
}
 0x2d6   :  { %s1032_s21 = smov 128   ;;  %s1033_s23 = smov 8  }
 0x2d7   :  { %720 = dma.vmem_to_hbm [thread:$0]  %s715_s17, 256, %s1327_s12, [#allocation4], %s1032_s21, %s1032_s21, %s1033_s23  }
 0x2d8   :  { %1024 = dma.done.wait [#allocation4], 256  }
 0x2d9   :  { %1025 = vsyncadd [#allocation4], 4294967040 }
 0x2da   :  { %724 = vsyncpa [#allocation3], 1 }
 0x2db   :  { %725 = vsyncpa [#allocation6], 1 }
 0x2dc   :  { %726 = vsyncpa [#allocation4], 1 }

</bundles_post_ra>
